<compile_context>
chip_gen: v5e
topology: v5e:2x2
jax: 0.10.0
libtpu: 0.0.40
codegen_flags: <defaults>
</compile_context>

<pallas_src>
import functools

import jax
import jax.numpy as jnp
from jax import lax
from jax.experimental import pallas as pl
from jax.experimental.pallas import tpu as pltpu


def _round_up(x, m):
    return ((x + m - 1) // m) * m


def swem_kernel(tok_ref, emb_ref, w1_ref, b1_ref, w2_ref, b2_ref, out_ref,
                *, inv_seq_len):
    # tok_ref: (S, TB) int32  token ids for this batch tile
    # emb_ref: (Vp, Ep)       padded embedding table (bf16)
    # w1_ref : (Ep, Hp) bf16, b1_ref: (1, Hp) f32
    # w2_ref : (Hp, Op) bf16, b2_ref: (1, Op) f32
    # out_ref: (TB, Op) f32
    s, tb = tok_ref.shape
    vp = emb_ref.shape[0]

    # --- fused embedding pooling: counts(b, v) = #{s : ids[s, b] == v} -------
    ids = tok_ref[...]                                           # (S, TB) int32
    vocab_iota = lax.broadcasted_iota(jnp.int32, (s, tb, vp), 2)  # (S, TB, Vp)
    onehot = (ids[:, :, None] == vocab_iota).astype(jnp.float32)  # (S, TB, Vp)
    counts = jnp.sum(onehot, axis=0)                              # (TB, Vp) f32

    # sum_s emb[ids[s]]  ==  counts @ emb_table   (one MXU matmul, K = vocab)
    table = emb_ref[...].astype(jnp.float32)                      # (Vp, Ep)
    pooled = jnp.dot(counts, table,
                     preferred_element_type=jnp.float32)          # (TB, Ep)
    pooled = pooled * inv_seq_len                                 # mean over seq

    # --- fc1 -> relu -> fc2 (f32 accumulation, bf16-streamed weights) --------
    h = jnp.dot(pooled, w1_ref[...].astype(jnp.float32),
                preferred_element_type=jnp.float32) + b1_ref[...]  # (TB, Hp)
    h = jnp.maximum(h, 0.0)
    y = jnp.dot(h, w2_ref[...].astype(jnp.float32),
                preferred_element_type=jnp.float32) + b2_ref[...]  # (TB, Op)
    out_ref[...] = y.astype(out_ref.dtype)


def swem_forward(token_ids, emb_table, w1, b1, w2, b2,
                 *, param_dtype=jnp.bfloat16, batch_tile=128):
    """token_ids: (S, B) int32. Returns (B, num_outputs) float32."""
    S, B = token_ids.shape
    V, E = emb_table.shape
    H = w1.shape[0]
    O = w2.shape[0]

    # Lane/sublane-friendly padded sizes (lane-dense outputs, full MXU columns).
    Vp = _round_up(V, 128)
    Ep = _round_up(E, 128)
    Hp = _round_up(H, 128)
    Op = _round_up(O, 128)

    # Batch tile: single padded tile when the batch fits, else 128-row tiles.
    if B <= batch_tile:
        TB = _round_up(B, 8)
        Bp = TB
    else:
        TB = _round_up(batch_tile, 128)
        Bp = _round_up(B, TB)

    f32 = jnp.float32
    emb_p = jnp.zeros((Vp, Ep), param_dtype).at[:V, :E].set(
        emb_table.astype(param_dtype))
    w1_p = jnp.zeros((Ep, Hp), param_dtype).at[:E, :H].set(
        w1.T.astype(param_dtype))
    b1_p = jnp.zeros((1, Hp), f32).at[0, :H].set(b1.astype(f32))
    w2_p = jnp.zeros((Hp, Op), param_dtype).at[:H, :O].set(
        w2.T.astype(param_dtype))
    b2_p = jnp.zeros((1, Op), f32).at[0, :O].set(b2.astype(f32))
    tok_p = jnp.zeros((S, Bp), jnp.int32).at[:, :B].set(
        token_ids.astype(jnp.int32))

    grid = (Bp // TB,)
    kernel = functools.partial(swem_kernel, inv_seq_len=1.0 / S)

    itemsize = jnp.dtype(param_dtype).itemsize
    flops = 2 * Bp * (Vp * Ep + Ep * Hp + Hp * Op)
    bytes_accessed = (tok_p.size * 4
                      + (emb_p.size + w1_p.size + w2_p.size) * itemsize
                      + (b1_p.size + b2_p.size) * 4
                      + Bp * Op * 4)

    out = pl.pallas_call(
        kernel,
        out_shape=jax.ShapeDtypeStruct((Bp, Op), f32),
        grid=grid,
        in_specs=[
            pl.BlockSpec((S, TB), lambda i: (0, i)),    # token ids per batch tile
            pl.BlockSpec((Vp, Ep), lambda i: (0, 0)),   # VMEM-resident table
            pl.BlockSpec((Ep, Hp), lambda i: (0, 0)),   # VMEM-resident W1
            pl.BlockSpec((1, Hp), lambda i: (0, 0)),
            pl.BlockSpec((Hp, Op), lambda i: (0, 0)),   # VMEM-resident W2
            pl.BlockSpec((1, Op), lambda i: (0, 0)),
        ],
        out_specs=pl.BlockSpec((TB, Op), lambda i: (i, 0)),
        compiler_params=pltpu.CompilerParams(
            dimension_semantics=("parallel",),
            vmem_limit_bytes=32 * 1024 * 1024,
        ),
        cost_estimate=pl.CostEstimate(flops=flops, transcendentals=0,
                                      bytes_accessed=bytes_accessed),
    )(tok_p, emb_p, w1_p, b1_p, w2_p, b2_p)

    return out[:B, :O]


if __name__ == "__main__":
    # Small, deterministic shapes consistent with the module.
    vocab_size = 50
    embedding_size = 32
    hidden_dim = 32
    num_outputs = 8
    seq_len = 8
    batch = 4

    key = jax.random.PRNGKey(0)
    k_ids, k_emb, k_w1, k_b1, k_w2, k_b2 = jax.random.split(key, 6)

    token_ids = jax.random.randint(k_ids, (seq_len, batch), 0, vocab_size,
                                   dtype=jnp.int32)
    emb_table = jax.random.normal(k_emb, (vocab_size, embedding_size),
                                  dtype=jnp.float32) * 0.1
    # nn.Linear weight shapes: (out_features, in_features)
    w1 = jax.random.normal(k_w1, (hidden_dim, embedding_size),
                           dtype=jnp.float32) * 0.1
    b1 = jax.random.normal(k_b1, (hidden_dim,), dtype=jnp.float32) * 0.1
    w2 = jax.random.normal(k_w2, (num_outputs, hidden_dim),
                           dtype=jnp.float32) * 0.1
    b2 = jax.random.normal(k_b2, (num_outputs,), dtype=jnp.float32) * 0.1

    out = swem_forward(token_ids, emb_table, w1, b1, w2, b2)
    out = jax.block_until_ready(out)

    # Pure-JAX reference using the same bf16-quantized parameters the kernel
    # streams (accumulation stays f32 in both), so the comparison isolates
    # kernel correctness.
    def q(x):
        return x.astype(jnp.bfloat16).astype(jnp.float32)

    emb_x = jnp.take(q(emb_table), token_ids, axis=0)
    ref = jnp.mean(emb_x, axis=0)
    ref = jnp.maximum(ref @ q(w1).T + b1, 0.0)
    ref = ref @ q(w2).T + b2

    assert out.shape == (batch, num_outputs)
    max_err = float(jnp.max(jnp.abs(out - ref)))
    assert jnp.allclose(out, ref, atol=1e-4, rtol=1e-3), max_err
    print("KERNEL_OK")
</pallas_src>

<mosaic_0001>
module attributes {stable_mosaic.version = 11 : i64} {
  func.func @swem_kernel(%arg0: i32, %arg1: memref<8x8xi32, #tpu.memory_space<vmem>>, %arg2: memref<128x128xbf16, #tpu.memory_space<vmem>>, %arg3: memref<128x128xbf16, #tpu.memory_space<vmem>>, %arg4: memref<1x128xf32, #tpu.memory_space<vmem>>, %arg5: memref<128x128xbf16, #tpu.memory_space<vmem>>, %arg6: memref<1x128xf32, #tpu.memory_space<vmem>>, %arg7: memref<8x128xf32, #tpu.memory_space<vmem>>) attributes {dimension_semantics = [#tpu.dimension_semantics<parallel>], iteration_bounds = array<i64: 1>, scalar_prefetch = 0 : i64, scratch_operands = 0 : i64, tpu.core_type = #tpu.core_type<tc>, window_params = [{transform_indices = @transform_0, window_bounds = array<i64: 8, 8>}, {pipeline_mode = #tpu.pipeline_mode<synchronous>, transform_indices = @transform_1, window_bounds = array<i64: 128, 128>}, {pipeline_mode = #tpu.pipeline_mode<synchronous>, transform_indices = @transform_2, window_bounds = array<i64: 128, 128>}, {pipeline_mode = #tpu.pipeline_mode<synchronous>, transform_indices = @transform_3, window_bounds = array<i64: 1, 128>}, {pipeline_mode = #tpu.pipeline_mode<synchronous>, transform_indices = @transform_4, window_bounds = array<i64: 128, 128>}, {pipeline_mode = #tpu.pipeline_mode<synchronous>, transform_indices = @transform_5, window_bounds = array<i64: 1, 128>}, {transform_indices = @transform_6, window_bounds = array<i64: 8, 128>}]} {
    %c0 = arith.constant 0 : index
    %c0_0 = arith.constant 0 : index
    %0 = vector.load %arg1[%c0, %c0_0] : memref<8x8xi32, #tpu.memory_space<vmem>>, vector<8x8xi32>
    %1 = tpu.iota {dimensions = array<i32: 2>} : vector<8x8x128xi32>
    %2 = vector.shape_cast %0 : vector<8x8xi32> to vector<8x8x1xi32>
    %3 = vector.broadcast %2 : vector<8x8x1xi32> to vector<8x8x128xi32>
    %4 = arith.cmpi eq, %3, %1 : vector<8x8x128xi32>
    %5 = arith.extui %4 : vector<8x8x128xi1> to vector<8x8x128xi32>
    %6 = arith.sitofp %5 : vector<8x8x128xi32> to vector<8x8x128xf32>
    %cst = arith.constant dense<0.000000e+00> : vector<8x128xf32>
    %7 = vector.multi_reduction <add>, %6, %cst [0] : vector<8x8x128xf32> to vector<8x128xf32>
    %c0_1 = arith.constant 0 : index
    %c0_2 = arith.constant 0 : index
    %8 = vector.load %arg2[%c0_1, %c0_2] : memref<128x128xbf16, #tpu.memory_space<vmem>>, vector<128x128xbf16>
    %9 = arith.extf %8 : vector<128x128xbf16> to vector<128x128xf32>
    %cst_3 = arith.constant dense<0.000000e+00> : vector<8x128xf32>
    %10 = tpu.matmul %7, %9, %cst_3 {dimension_numbers = #tpu.dot_dimension_numbers<[1], [0], [0], [1], [0, 0, 1, 1], [], []>} : vector<8x128xf32>, vector<128x128xf32>, vector<8x128xf32> -> vector<8x128xf32>
    %cst_4 = arith.constant 1.250000e-01 : f32
    %11 = vector.broadcast %cst_4 : f32 to vector<8x128xf32>
    %12 = arith.mulf %10, %11 : vector<8x128xf32>
    %c0_5 = arith.constant 0 : index
    %c0_6 = arith.constant 0 : index
    %13 = vector.load %arg3[%c0_5, %c0_6] : memref<128x128xbf16, #tpu.memory_space<vmem>>, vector<128x128xbf16>
    %14 = arith.extf %13 : vector<128x128xbf16> to vector<128x128xf32>
    %cst_7 = arith.constant dense<0.000000e+00> : vector<8x128xf32>
    %15 = tpu.matmul %12, %14, %cst_7 {dimension_numbers = #tpu.dot_dimension_numbers<[1], [0], [0], [1], [0, 0, 1, 1], [], []>} : vector<8x128xf32>, vector<128x128xf32>, vector<8x128xf32> -> vector<8x128xf32>
    %c0_8 = arith.constant 0 : index
    %c0_9 = arith.constant 0 : index
    %16 = vector.load %arg4[%c0_8, %c0_9] : memref<1x128xf32, #tpu.memory_space<vmem>>, vector<1x128xf32>
    %17 = vector.broadcast %16 : vector<1x128xf32> to vector<8x128xf32>
    %18 = arith.addf %15, %17 : vector<8x128xf32>
    %cst_10 = arith.constant 0.000000e+00 : f32
    %19 = vector.broadcast %cst_10 : f32 to vector<8x128xf32>
    %20 = arith.maximumf %18, %19 : vector<8x128xf32>
    %c0_11 = arith.constant 0 : index
    %c0_12 = arith.constant 0 : index
    %21 = vector.load %arg5[%c0_11, %c0_12] : memref<128x128xbf16, #tpu.memory_space<vmem>>, vector<128x128xbf16>
    %22 = arith.extf %21 : vector<128x128xbf16> to vector<128x128xf32>
    %cst_13 = arith.constant dense<0.000000e+00> : vector<8x128xf32>
    %23 = tpu.matmul %20, %22, %cst_13 {dimension_numbers = #tpu.dot_dimension_numbers<[1], [0], [0], [1], [0, 0, 1, 1], [], []>} : vector<8x128xf32>, vector<128x128xf32>, vector<8x128xf32> -> vector<8x128xf32>
    %c0_14 = arith.constant 0 : index
    %c0_15 = arith.constant 0 : index
    %24 = vector.load %arg6[%c0_14, %c0_15] : memref<1x128xf32, #tpu.memory_space<vmem>>, vector<1x128xf32>
    %25 = vector.broadcast %24 : vector<1x128xf32> to vector<8x128xf32>
    %26 = arith.addf %23, %25 : vector<8x128xf32>
    %c0_16 = arith.constant 0 : index
    %c0_17 = arith.constant 0 : index
    %27 = vector.load %arg7[%c0_16, %c0_17] : memref<8x128xf32, #tpu.memory_space<vmem>>, vector<8x128xf32>
    tpu.vector_store %arg7[%c0_16, %c0_17], %26 {strides = array<i32>} : memref<8x128xf32, #tpu.memory_space<vmem>>, vector<8x128xf32>,
    return
  }
  func.func @transform_0(%arg0: i32) -> (i32, i32) {
    %c0_i32 = arith.constant 0 : i32
    %c0_i32_0 = arith.constant 0 : i32
    return %c0_i32, %arg0 : i32, i32
  }
  func.func @transform_1(%arg0: i32) -> (i32, i32) {
    %c0_i32 = arith.constant 0 : i32
    %c0_i32_0 = arith.constant 0 : i32
    %c0_i32_1 = arith.constant 0 : i32
    return %c0_i32, %c0_i32_0 : i32, i32
  }
  func.func @transform_2(%arg0: i32) -> (i32, i32) {
    %c0_i32 = arith.constant 0 : i32
    %c0_i32_0 = arith.constant 0 : i32
    %c0_i32_1 = arith.constant 0 : i32
    return %c0_i32, %c0_i32_0 : i32, i32
  }
  func.func @transform_3(%arg0: i32) -> (i32, i32) {
    %c0_i32 = arith.constant 0 : i32
    %c0_i32_0 = arith.constant 0 : i32
    %c0_i32_1 = arith.constant 0 : i32
    return %c0_i32, %c0_i32_0 : i32, i32
  }
  func.func @transform_4(%arg0: i32) -> (i32, i32) {
    %c0_i32 = arith.constant 0 : i32
    %c0_i32_0 = arith.constant 0 : i32
    %c0_i32_1 = arith.constant 0 : i32
    return %c0_i32, %c0_i32_0 : i32, i32
  }
  func.func @transform_5(%arg0: i32) -> (i32, i32) {
    %c0_i32 = arith.constant 0 : i32
    %c0_i32_0 = arith.constant 0 : i32
    %c0_i32_1 = arith.constant 0 : i32
    return %c0_i32, %c0_i32_0 : i32, i32
  }
  func.func @transform_6(%arg0: i32) -> (i32, i32) {
    %c0_i32 = arith.constant 0 : i32
    %c0_i32_0 = arith.constant 0 : i32
    return %arg0, %c0_i32 : i32, i32
  }
}

</mosaic_0001>

<bundles_post_ra>
// kernel: tpu_custom_call.1
= control target key start
LH: loop header
LB: loop body
LE: loop exit
PB: predicated region body
PF: predicated region fallthrough
CT: control target
= control target key end

     0   :  { %11 = vsyncpa [#allocation3], 0  ;;  %s693_s0 = inlined_call_operand.hbm [shape: s32[8,8], index: 0, kind: input, shape index: {}]   ;;  %s694_s1 = inlined_call_operand.hbm [shape: bf16[128,128], index: 1, kind: input, shape index: {}]   ;;  %s695_s2 = inlined_call_operand.hbm [shape: bf16[128,128], index: 2, kind: input, shape index: {}]   ;;  %s696_s3 = inlined_call_operand.vmem [shape: f32[1,128], index: 3, kind: input, shape index: {}]   ;;  %s697_s4 = inlined_call_operand.hbm [shape: bf16[128,128], index: 4, kind: input, shape index: {}]   ;;  %s698_s5 = inlined_call_operand.vmem [shape: f32[1,128], index: 5, kind: input, shape index: {}]   ;;  %s699_s6 = inlined_call_operand.hbm [shape: f32[8,128], index: 6, kind: output, shape index: {}]  }
   0x1   :  { %12 = vsyncpa [#allocation6], 0 }
   0x2   :  { %13 = vsyncpa [#allocation9], 0  ;;  %s30_s23 = sshll.u32 %s694_s1, 4  ;;  %s31_s23 = int_to_ptr.hbm [resolvable:$true] %s30_s23 }
   0x3   :  { %14 = vsyncpa [#allocation4], 0  ;;  %s627_s24 = smov [#allocation5]   ;;  %s20_s28 = sshll.u32 %s693_s0, 4  ;;  %s21_s28 = int_to_ptr.hbm [resolvable:$true] %s20_s28 }
   0x4   :  { %s32_s25 = sshll.u32 %s627_s24, 4  ;;  %s628_s29 = smov 64   ;;  %s33_s25 = int_to_ptr.vmem [resolvable:$true] %s32_s25 }
   0x5   :  { %s629_s30 = smov 4   ;;  %s630_s7 = smov [#allocation2]  }
   0x6   :  { %38 = dma.hbm_to_vmem [thread:$0]  %s31_s23, 1024, %s33_s25, [#allocation6], %s628_s29, %s628_s29, %s629_s30  }
   0x7   :  { %s22_s8 = sshll.u32 %s630_s7, 4  ;;  %s43_s11 = sshll.u32 %s695_s2, 4  ;;  %s23_s8 = int_to_ptr.vmem [resolvable:$true] %s22_s8  ;;  %s44_s11 = int_to_ptr.hbm [resolvable:$true] %s43_s11 }
   0x8   :  { %25 = dma.hbm_to_vmem [thread:$0]  %s21_s28, 128, %s23_s8, [#allocation3]  }
   0x9   :  { %s58_s13 = sshll.u32 %s697_s4, 4  ;;  %s631_s14 = smov [#allocation7]   ;;  %s59_s13 = int_to_ptr.hbm [resolvable:$true] %s58_s13 }
   0xa   :  { %s45_s15 = sshll.u32 %s631_s14, 4  ;;  %s632_s0 = smov [#allocation8]   ;;  %s46_s15 = int_to_ptr.vmem [resolvable:$true] %s45_s15 }
   0xb   :  { %51 = dma.hbm_to_vmem [thread:$0]  %s44_s11, 1024, %s46_s15, [#allocation6], %s628_s29, %s628_s29, %s629_s30  }
   0xc   :  { %s60_s16 = sshll.u32 %s632_s0, 4  ;;  %s61_s16 = int_to_ptr.vmem [resolvable:$true] %s60_s16 }
   0xd   :  { %66 = dma.hbm_to_vmem [thread:$0]  %s59_s13, 1024, %s61_s16, [#allocation9], %s628_s29, %s628_s29, %s629_s30  }
   0xe   :  { %619 = dma.done.wait [#allocation3], 128  }
   0xf   :  { %620 = vsyncadd [#allocation3], 4294967168 }
  0x10   :  { %621 = dma.done.wait [#allocation6], 2048  }
  0x11   :  { %622 = vsyncadd [#allocation6], 4294965248 }
  0x12   :  { %623 = dma.done.wait [#allocation9], 1024  }
  0x13   :  { %624 = vsyncadd [#allocation9], 4294966272  ;;  %v86_v0 = vlaneseq  ;;  %v85_v2 = vld [vmem:[#allocation2] sm:$0xff]  ;;  %v470_v8 = vld [vmem:[#allocation5 + $0x30] sm:$0xff]   ;;  %v633_v56 = vmov 0.0   ;;  %s634_s19 = smov [#allocation10]  }
  0x14   :  { %v471_v3 = vld [vmem:[#allocation5 + $0x38] sm:$0xff]   ;;  %v102_v4 = vperm.slane %v85_v2, 2  ;;  %v88_v5 = vperm.slane %v85_v2, 0  ;;  %v116_v6 = vperm.slane %v85_v2, 4  ;;  %v396_v10 = vunpack.c.h.bf16 %v470_v8  ;;  %v469_v17 = vld [vmem:[#allocation5 + $0x28] sm:$0xff]   ;;  %v468_v20 = vld [vmem:[#allocation5 + $0x20] sm:$0xff]  }
  0x15   :  { %v90_v1 = vshrl.u32 %v86_v0, 7  ;;  %v400_v7 = vunpack.c.h.bf16 %v471_v3  ;;  %v399_v9 = vunpack.c.l.bf16 %v471_v3  ;;  %v395_v11 = vunpack.c.l.bf16 %v470_v8  ;;  %v467_v23 = vld [vmem:[#allocation5 + $0x18] sm:$0xff]   ;;  %v466_v26 = vld [vmem:[#allocation5 + $0x10] sm:$0xff]   ;;  %v465_v29 = vld [vmem:[#allocation5 + $0x8] sm:$0xff]   ;;  %s347_s20 = sshll.u32 %s634_s19, 4  ;;  %s349_s23 = sshll.u32 %s699_s6, 4  ;;  %s348_s20 = int_to_ptr.vmem [resolvable:$true] %s347_s20  ;;  %s350_s23 = int_to_ptr.hbm [resolvable:$true] %s349_s23 }
  0x16   :  { %v109_v12 = vperm.slane %v85_v2, 3  ;;  %v95_v13 = vperm.slane %v85_v2, 1  ;;  %v123_v14 = vperm.slane %v85_v2, 5  ;;  %v137_v15 = vperm.slane %v85_v2, 7  ;;  %v370_v32 = vld [vmem:[#allocation5] sm:$0xff]   ;;  %v478_v35 = vld [vmem:[#allocation7 + $0x38] sm:$0xff]  }
  0x17   :  { %495 = vset.pattern.permute.xlu1 %v90_v1  ;;  %494 = vset.pattern.permute.xlu0 %v90_v1  ;;  %v130_v16 = vperm.slane %v85_v2, 6  ;;  %v392_v18 = vunpack.c.h.bf16 %v469_v17  ;;  %v391_v19 = vunpack.c.l.bf16 %v469_v17  ;;  %v388_v21 = vunpack.c.h.bf16 %v468_v20  ;;  %v477_v36 = vld [vmem:[#allocation7 + $0x30] sm:$0xff]   ;;  %v476_v40 = vld [vmem:[#allocation7 + $0x28] sm:$0xff]   ;;  %v475_v45 = vld [vmem:[#allocation7 + $0x20] sm:$0xff]  }
  0x18   :  { %496 = vset.pattern.permute.xlu2 %v90_v1  ;;  %207 = vmatpush.msra.mxu0 %v400_v7  ;;  %v387_v22 = vunpack.c.l.bf16 %v468_v20  ;;  %v384_v24 = vunpack.c.h.bf16 %v467_v23  ;;  %v383_v25 = vunpack.c.l.bf16 %v467_v23  ;;  %v380_v27 = vunpack.c.h.bf16 %v466_v26  ;;  %v474_v50 = vld [vmem:[#allocation7 + $0x18] sm:$0xff]   ;;  %v473_v55 = vld [vmem:[#allocation7 + $0x10] sm:$0xff]   ;;  %v472_v1 = vld [vmem:[#allocation7 + $0x8] sm:$0xff]  }
  0x19   :  { %v379_v28 = vunpack.c.l.bf16 %v466_v26  ;;  %v376_v30 = vunpack.c.h.bf16 %v465_v29  ;;  %v375_v31 = vunpack.c.l.bf16 %v465_v29  ;;  %v372_v33 = vunpack.c.h.bf16 %v370_v32  ;;  %v402_v17 = vld [vmem:[#allocation7] sm:$0xff]   ;;  %v485_v20 = vld [vmem:[#allocation8 + $0x38] sm:$0xff]  }
  0x1a   :  { %208 = vmatpush.msra.mxu0 %v399_v9  ;;  %v371_v34 = vunpack.c.l.bf16 %v370_v32  ;;  %v432_v37 = vunpack.c.h.bf16 %v478_v35  ;;  %v431_v38 = vunpack.c.l.bf16 %v478_v35  ;;  %v428_v39 = vunpack.c.h.bf16 %v477_v36 }
  0x1b   :  { %v427_v41 = vunpack.c.l.bf16 %v477_v36  ;;  %v424_v44 = vunpack.c.h.bf16 %v476_v40  ;;  %v423_v47 = vunpack.c.l.bf16 %v476_v40  ;;  %v87_v48 = vand.u32 127, %v86_v0 }
  0x1c   :  { %209 = vmatpush.msra.mxu0 %v396_v10  ;;  %264 = vmatpush.msra.mxu1 %v432_v37  ;;  %v420_v49 = vunpack.c.h.bf16 %v475_v45  ;;  %v419_v51 = vunpack.c.l.bf16 %v475_v45  ;;  %v416_v54 = vunpack.c.h.bf16 %v474_v50  ;;  %v415_v59 = vunpack.c.l.bf16 %v474_v50  ;;  %v479_v37 = vld [vmem:[#allocation8 + $0x8] sm:$0xff]   ;;  %v498_v50 = vld [vmem:[%s698_s5] ss:$0 sm:$0xff] }
  0x1d   :  { %v412_v63 = vunpack.c.h.bf16 %v473_v55  ;;  %v411_v3 = vunpack.c.l.bf16 %v473_v55  ;;  %v408_v8 = vunpack.c.h.bf16 %v472_v1  ;;  %v463_v23 = vunpack.c.l.bf16 %v485_v20 }
  0x1e   :  { %210 = vmatpush.msra.mxu0 %v395_v11  ;;  %265 = vmatpush.msra.mxu1 %v431_v38  ;;  %v407_v11 = vunpack.c.l.bf16 %v472_v1 }
  0x1f   :  { %107 = vperm.xlu1 %495, %v102_v4   ;;  %93 = vperm.xlu0 %494, %v88_v5  }
  0x20   :  { %121 = vperm.xlu2 %496, %v116_v6   ;;  %211 = vmatpush.msra.mxu0 %v392_v18  ;;  %v404_v18 = vunpack.c.h.bf16 %v402_v17 }
  0x21   :  { %266 = vmatpush.msra.mxu1 %v428_v39  ;;  %v440_v39 = vunpack.c.h.bf16 %v479_v37 }
  0x22   :  { %212 = vmatpush.msra.mxu0 %v391_v19  ;;  %v403_v19 = vunpack.c.l.bf16 %v402_v17 }
  0x23   :  { %267 = vmatpush.msra.mxu1 %v427_v41 }
  0x24   :  { %213 = vmatpush.msra.mxu0 %v388_v21  ;;  %v484_v21 = vld [vmem:[#allocation8 + $0x30] sm:$0xff]  }
  0x25   :  { %268 = vmatpush.msra.mxu1 %v424_v44  ;;  %v459_v26 = vunpack.c.l.bf16 %v484_v21 }
  0x26   :  { %214 = vmatpush.msra.mxu0 %v387_v22  ;;  %v464_v22 = vunpack.c.h.bf16 %v485_v20 }
  0x27   :  { %114 = vperm.xlu1 %495, %v109_v12   ;;  %100 = vperm.xlu0 %494, %v95_v13  }
  0x28   :  { %128 = vperm.xlu2 %496, %v123_v14   ;;  %215 = vmatpush.msra.mxu0 %v384_v24  ;;  %v460_v24 = vunpack.c.h.bf16 %v484_v21 }
  0x29   :  { %269 = vmatpush.msra.mxu1 %v423_v47  ;;  %321 = vmatpush.msra.mxu2 %v464_v22 }
  0x2a   :  { %216 = vmatpush.msra.mxu0 %v383_v25  ;;  %v483_v25 = vld [vmem:[#allocation8 + $0x28] sm:$0xff]  }
  0x2b   :  { %270 = vmatpush.msra.mxu1 %v420_v49  ;;  %322 = vmatpush.msra.mxu2 %v463_v23  ;;  %v455_v29 = vunpack.c.l.bf16 %v483_v25 }
  0x2c   :  { %217 = vmatpush.msra.mxu0 %v380_v27  ;;  %v456_v27 = vunpack.c.h.bf16 %v483_v25 }
  0x2d   :  { %271 = vmatpush.msra.mxu1 %v419_v51  ;;  %323 = vmatpush.msra.mxu2 %v460_v24 }
  0x2e   :  { %218 = vmatpush.msra.mxu0 %v379_v28  ;;  %v482_v28 = vld [vmem:[#allocation8 + $0x20] sm:$0xff]  }
  0x2f   :  { %142 = vperm.xlu1 %495, %v137_v15   ;;  %135 = vperm.xlu0 %494, %v130_v16   ;;  %v451_v32 = vunpack.c.l.bf16 %v482_v28 }
  0x30   :  { %219 = vmatpush.msra.mxu0 %v376_v30  ;;  %272 = vmatpush.msra.mxu1 %v416_v54  ;;  %v452_v30 = vunpack.c.h.bf16 %v482_v28 }
  0x31   :  { %324 = vmatpush.msra.mxu2 %v459_v26 }
  0x32   :  { %220 = vmatpush.msra.mxu0 %v375_v31  ;;  %273 = vmatpush.msra.mxu1 %v415_v59  ;;  %v481_v31 = vld [vmem:[#allocation8 + $0x18] sm:$0xff]  }
  0x33   :  { %325 = vmatpush.msra.mxu2 %v456_v27  ;;  %v447_v35 = vunpack.c.l.bf16 %v481_v31 }
  0x34   :  { %221 = vmatpush.msra.mxu0 %v372_v33  ;;  %274 = vmatpush.msra.mxu1 %v412_v63  ;;  %v448_v33 = vunpack.c.h.bf16 %v481_v31 }
  0x35   :  { %326 = vmatpush.msra.mxu2 %v455_v29 }
  0x36   :  { %222 = vmatpush.msra.mxu0 %v371_v34  ;;  %275 = vmatpush.msra.mxu1 %v411_v3  ;;  %v480_v34 = vld [vmem:[#allocation8 + $0x10] sm:$0xff]  }
  0x37   :  { %327 = vmatpush.msra.mxu2 %v452_v30  ;;  %v444_v36 = vunpack.c.h.bf16 %v480_v34  ;;  %v443_v38 = vunpack.c.l.bf16 %v480_v34 }
  0x38   :  { %276 = vmatpush.msra.mxu1 %v408_v8 }
  0x39   :  { %328 = vmatpush.msra.mxu2 %v451_v32 }
  0x3a   :  { %277 = vmatpush.msra.mxu1 %v407_v11 }
  0x3b   :  { %329 = vmatpush.msra.mxu2 %v448_v33 }
  0x3c   :  { %278 = vmatpush.msra.mxu1 %v404_v18 }
  0x3d   :  { %330 = vmatpush.msra.mxu2 %v447_v35 }
  0x3e   :  { %279 = vmatpush.msra.mxu1 %v403_v19 }
  0x3f   :  { %331 = vmatpush.msra.mxu2 %v444_v36 }
  0x41   :  { %332 = vmatpush.msra.mxu2 %v443_v38 }
  0x43   :  { %333 = vmatpush.msra.mxu2 %v440_v39 }
  0x7a   :  { %v122_v46 = vpop.permute.xlu2 %121 }
  0x7b   :  { %vm148_vm4 = vcmp.eq.s32.totalorder %v122_v46, %v87_v48  ;;  %v497_v46 = vld [vmem:[%s696_s3] ss:$0 sm:$0xff] }
  0x7c   :  { %v365_v5 = vsel %vm148_vm4, 1.0, %v633_v56 }
  0x82   :  { %v129_v62 = vpop.permute.xlu2 %128 }
  0x83   :  { %vm149_vm5 = vcmp.eq.s32.totalorder %v129_v62, %v87_v48 }
  0x84   :  { %v366_v10 = vsel %vm149_vm5, 1.0, %v633_v56 }
  0x91   :  { %v108_v42 = vpop.permute.xlu1 %107  ;;  %v94_v43 = vpop.permute.xlu0 %93 }
  0x92   :  { %vm144_vm0 = vcmp.eq.s32.totalorder %v94_v43, %v87_v48  ;;  %vm146_vm1 = vcmp.eq.s32.totalorder %v108_v42, %v87_v48  ;;  %v439_v42 = vunpack.c.l.bf16 %v479_v37  ;;  %v434_v43 = vld [vmem:[#allocation8] sm:$0xff]  }
  0x93   :  { %v361_v57 = vsel %vm144_vm0, 1.0, %v633_v56  ;;  %v363_v61 = vsel %vm146_vm1, 1.0, %v633_v56  ;;  %v436_v44 = vunpack.c.h.bf16 %v434_v43  ;;  %v435_v45 = vunpack.c.l.bf16 %v434_v43 }
  0x94   :  { %334 = vmatpush.msra.mxu2 %v439_v42 }
  0x96   :  { %335 = vmatpush.msra.mxu2 %v436_v44 }
  0x98   :  { %336 = vmatpush.msra.mxu2 %v435_v45 }
  0x99   :  { %v115_v52 = vpop.permute.xlu1 %114  ;;  %v101_v53 = vpop.permute.xlu0 %100 }
  0x9a   :  { %vm145_vm2 = vcmp.eq.s32.totalorder %v101_v53, %v87_v48  ;;  %vm147_vm3 = vcmp.eq.s32.totalorder %v115_v52, %v87_v48 }
  0x9b   :  { %v362_v58 = vsel %vm145_vm2, 1.0, %v633_v56  ;;  %v364_v2 = vsel %vm147_vm3, 1.0, %v633_v56 }
  0x9c   :  { %v168_v60 = vadd.f32 %v362_v58, %v361_v57 }
  0x9e   :  { %v169_v0 = vadd.f32 %v363_v61, %v168_v60 }
  0xa0   :  { %v170_v4 = vadd.f32 %v364_v2, %v169_v0 }
  0xa1   :  { %v143_v6 = vpop.permute.xlu1 %142  ;;  %v136_v7 = vpop.permute.xlu0 %135 }
  0xa2   :  { %v171_v9 = vadd.f32 %v365_v5, %v170_v4  ;;  %vm150_vm6 = vcmp.eq.s32.totalorder %v136_v7, %v87_v48  ;;  %vm151_vm7 = vcmp.eq.s32.totalorder %v143_v6, %v87_v48 }
  0xa3   :  { %v367_v13 = vsel %vm150_vm6, 1.0, %v633_v56  ;;  %v368_v15 = vsel %vm151_vm7, 1.0, %v633_v56 }
  0xa4   :  { %v172_v12 = vadd.f32 %v366_v10, %v171_v9 }
  0xa6   :  { %v173_v14 = vadd.f32 %v367_v13, %v172_v12 }
  0xa8   :  { %v174_v16 = vadd.f32 %v368_v15, %v173_v14 }
  0xaa   :  { %223 = vmatmul.f32.vlgmr.msra.gmra.mxu0 %v174_v16 }
 0x127   :  { %v224_v40 = vpop.f32.mrf.mxu0 }
 0x128   :  { %v227_v41 = vmul.f32 0.125, %v224_v40 }
 0x12a   :  { %280 = vmatmul.f32.vlgmr.msra.gmra.mxu1 %v227_v41 }
 0x1a7   :  { %v281_v47 = vpop.f32.mrf.mxu1 }
 0x1a8   :  { %v282_v48 = vadd.f32 %v497_v46, %v281_v47 }
 0x1aa   :  { %v284_v49 = vmax.f32 %v282_v48, 0.0 }
 0x1ac   :  { %337 = vmatmul.f32.vlgmr.msra.gmra.mxu2 %v284_v49 }
 0x22f   :  { %v338_v51 = vpop.f32.mrf.mxu2 }
 0x230   :  { %v339_v52 = vadd.f32 %v498_v50, %v338_v51 }
 0x232   :  { %341 = vst [vmem:[#allocation10] sm:$0xff] %v339_v52 }
 0x233   :  { %352 = dma.vmem_to_hbm [thread:$0]  %s348_s20, 128, %s350_s23, [#allocation4]  }
 0x234   :  { %625 = dma.done.wait [#allocation4], 128  }
 0x235   :  { %626 = vsyncadd [#allocation4], 4294967168 }
 0x236   :  { %357 = vsyncpa [#allocation3], 1 }
 0x237   :  { %358 = vsyncpa [#allocation6], 1 }
 0x238   :  { %359 = vsyncpa [#allocation9], 1 }
 0x239   :  { %360 = vsyncpa [#allocation4], 1 }

</bundles_post_ra>
